<compile_context>
chip_gen: v7x
topology: tpu7x:2x2x1
jax: 0.10.0
libtpu: 0.0.40
codegen_flags: <defaults>
</compile_context>

<pallas_src>
import functools

import jax
import jax.numpy as jnp
from jax.experimental import pallas as pl
from jax.experimental.pallas import tpu as pltpu


# ----------------------------------------------------------------------------
# Fused Pallas kernel: 4 Linear layers + ReLU + per-row cross-entropy
# ----------------------------------------------------------------------------
def _mlp_fused_kernel(x_ref,
                      w1_ref, b1_ref,
                      w2_ref, b2_ref,
                      w3_ref, b3_ref,
                      w4_ref, b4_ref,
                      y_ref,
                      loss_ref):
    """x_ref: (TM, D_in) f32 tile. Weights: bf16 (in, out). Biases: f32 (1, out).

    fc2 weight/bias are lane-padded to 128 classes (zero weight cols, -1e30
    bias) so logits are a full-vreg (TM, 128) tile; padded classes contribute
    exp(-1e30) == 0 to logsumexp. loss_ref: (TM, 1) per-row CE loss.
    """

    def linear_relu(h_bf16, w_ref, b_ref):
        y = jnp.dot(h_bf16, w_ref[...], preferred_element_type=jnp.float32)
        y = y + b_ref[...]                      # f32 bias add / ReLU epilogue
        return jnp.maximum(y, 0.0).astype(jnp.bfloat16)   # single cast per layer

    h = x_ref[...].astype(jnp.bfloat16)                     # (TM, D_in)
    h = linear_relu(h, w1_ref, b1_ref)                       # fc1 + ReLU
    h = linear_relu(h, w2_ref, b2_ref)                       # m[0] + ReLU
    h = linear_relu(h, w3_ref, b3_ref)                       # m[1] + ReLU
    logits = jnp.dot(h, w4_ref[...],                         # fc2, (TM, 128) f32
                     preferred_element_type=jnp.float32) + b4_ref[...]

    # Per-row cross-entropy: logsumexp(logits_i) - logits_i[y_i]
    labels = y_ref[...]                                       # (TM, 1) int32
    m = jnp.max(logits, axis=-1, keepdims=True)               # (TM, 1)
    lse = m + jnp.log(jnp.sum(jnp.exp(logits - m), axis=-1, keepdims=True))
    cls_idx = jax.lax.broadcasted_iota(jnp.int32, logits.shape, 1)   # (TM, 128)
    picked = jnp.sum(jnp.where(cls_idx == labels, logits, 0.0),
                     axis=-1, keepdims=True)                  # (TM, 1)
    loss_ref[...] = lse - picked


# ----------------------------------------------------------------------------
# Wrapper: batch-tiled pallas_call, weights VMEM-resident, wrapper does mean.
# ----------------------------------------------------------------------------
def mlp_forward(params, x, y, *, tm=8):
    """Returns scalar mean cross-entropy loss, matching the PyTorch forward."""
    B, d_in = x.shape
    assert B % tm == 0, "demo assumes batch divisible by the tile size"
    # TODO(synk): for production batch sizes use tm=128 (v5e) / 256 (v6e, v7x)
    # and re-derive the VMEM budget for v7x's 64 MiB (32 MiB scoped default).
    num_tiles = B // tm

    resident = pl.BlockSpec(memory_space=pltpu.MemorySpace.VMEM)  # whole-array

    per_row_loss = pl.pallas_call(
        _mlp_fused_kernel,
        out_shape=jax.ShapeDtypeStruct((B, 1), jnp.float32),
        grid=(num_tiles,),
        in_specs=[
            pl.BlockSpec((tm, d_in), lambda i: (i, 0)),   # x, batch-tiled
            resident, resident,                           # fc1 w/b
            resident, resident,                           # m[0] w/b
            resident, resident,                           # m[1] w/b
            resident, resident,                           # fc2 w/b (lane-padded)
            pl.BlockSpec((tm, 1), lambda i: (i, 0)),      # labels, batch-tiled
        ],
        out_specs=pl.BlockSpec((tm, 1), lambda i: (i, 0)),
        compiler_params=pltpu.CompilerParams(
            dimension_semantics=("parallel",)),
    )(x,
      params["fc1_w"], params["fc1_b"],
      params["m0_w"], params["m0_b"],
      params["m1_w"], params["m1_b"],
      params["fc2_w"], params["fc2_b"],
      y)
    # Final mean reduction over the per-row losses (tiny, done in plain JAX).
    return jnp.mean(per_row_loss[:, 0])


def init_linear_params(key, fan_in, fan_out):
    """PyTorch nn.Linear default init: U(-1/sqrt(fan_in), 1/sqrt(fan_in))."""
    kw, kb = jax.random.split(key)
    bound = 1.0 / jnp.sqrt(float(fan_in))
    w = jax.random.uniform(kw, (fan_in, fan_out), jnp.float32, -bound, bound)
    b = jax.random.uniform(kb, (1, fan_out), jnp.float32, -bound, bound)
    return w, b


if __name__ == "__main__":
    # Small shapes consistent with the module structure (Linear stack + CE loss).
    B = 16             # batch (bf16 vreg packs 16 sublanes)
    TM = 8             # batch tile -> grid=(2,)
    INPUT_DIM = 128    # "input_dim"
    HIDDEN_DIM = 256   # "hidden_dim"
    OUTPUT_DIM = 10    # "output_dim" (number of classes)
    C_PAD = 128        # lane-dense padded class count
    NEG_BIG = -1e30    # padded-class bias (not -inf, avoids inf-inf NaNs)

    key = jax.random.PRNGKey(0)
    k_x, k_y, k1, k2, k3, k4 = jax.random.split(key, 6)

    fc1_w, fc1_b = init_linear_params(k1, INPUT_DIM, HIDDEN_DIM)
    m0_w, m0_b = init_linear_params(k2, HIDDEN_DIM, HIDDEN_DIM)
    m1_w, m1_b = init_linear_params(k3, HIDDEN_DIM, HIDDEN_DIM)
    fc2_w, fc2_b = init_linear_params(k4, HIDDEN_DIM, OUTPUT_DIM)

    # Lane-dense classifier padding: zero weight columns, -1e30 bias columns.
    fc2_w_pad = jnp.concatenate(
        [fc2_w, jnp.zeros((HIDDEN_DIM, C_PAD - OUTPUT_DIM), jnp.float32)], axis=1)
    fc2_b_pad = jnp.concatenate(
        [fc2_b, jnp.full((1, C_PAD - OUTPUT_DIM), NEG_BIG, jnp.float32)], axis=1)

    params = {
        # Weights stored bf16 (halves weight DMA); biases stay f32.
        "fc1_w": fc1_w.astype(jnp.bfloat16), "fc1_b": fc1_b,
        "m0_w": m0_w.astype(jnp.bfloat16), "m0_b": m0_b,
        "m1_w": m1_w.astype(jnp.bfloat16), "m1_b": m1_b,
        "fc2_w": fc2_w_pad.astype(jnp.bfloat16), "fc2_b": fc2_b_pad,
    }

    x = jax.random.normal(k_x, (B, INPUT_DIM), jnp.float32)
    y = jax.random.randint(k_y, (B, 1), 0, OUTPUT_DIM, jnp.int32)

    loss = mlp_forward(params, x, y, tm=TM)
    jax.block_until_ready(loss)

    # Pure-JAX reference with the same bf16-operand / f32-accumulate precision.
    def ref_forward(x, y):
        def lin_relu(h, w, b):
            o = jnp.dot(h.astype(jnp.bfloat16), w.astype(jnp.bfloat16),
                        preferred_element_type=jnp.float32) + b
            return jnp.maximum(o, 0.0)

        h = lin_relu(x, fc1_w, fc1_b)
        h = lin_relu(h, m0_w, m0_b)
        h = lin_relu(h, m1_w, m1_b)
        logits = jnp.dot(h.astype(jnp.bfloat16), fc2_w.astype(jnp.bfloat16),
                         preferred_element_type=jnp.float32) + fc2_b  # (B, 10)
        lse = jax.scipy.special.logsumexp(logits, axis=-1)
        picked = jnp.take_along_axis(logits, y, axis=-1)[:, 0]
        return jnp.mean(lse - picked)

    ref = ref_forward(x, y)
    assert jnp.allclose(loss, ref, rtol=1e-3, atol=1e-3), (loss, ref)

    print("KERNEL_OK")
</pallas_src>

<mosaic_0001>
module attributes {stable_mosaic.version = 11 : i64} {
  func.func @_mlp_fused_kernel(%arg0: i32, %arg1: memref<8x128xf32, #tpu.memory_space<vmem>>, %arg2: memref<128x256xbf16, #tpu.memory_space<vmem>>, %arg3: memref<1x256xf32, #tpu.memory_space<vmem>>, %arg4: memref<256x256xbf16, #tpu.memory_space<vmem>>, %arg5: memref<1x256xf32, #tpu.memory_space<vmem>>, %arg6: memref<256x256xbf16, #tpu.memory_space<vmem>>, %arg7: memref<1x256xf32, #tpu.memory_space<vmem>>, %arg8: memref<256x128xbf16, #tpu.memory_space<vmem>>, %arg9: memref<1x128xf32, #tpu.memory_space<vmem>>, %arg10: memref<8x1xi32, #tpu.memory_space<vmem>>, %arg11: memref<8x1xf32, #tpu.memory_space<vmem>>) attributes {dimension_semantics = [#tpu.dimension_semantics<parallel>], iteration_bounds = array<i64: 2>, scalar_prefetch = 0 : i64, scratch_operands = 0 : i64, tpu.core_type = #tpu.core_type<tc>, window_params = [{transform_indices = @transform_0, window_bounds = array<i64: 8, 128>}, {pipeline_mode = #tpu.pipeline_mode<synchronous>, transform_indices = @transform_1, window_bounds = array<i64: 128, 256>}, {pipeline_mode = #tpu.pipeline_mode<synchronous>, transform_indices = @transform_2, window_bounds = array<i64: 1, 256>}, {pipeline_mode = #tpu.pipeline_mode<synchronous>, transform_indices = @transform_3, window_bounds = array<i64: 256, 256>}, {pipeline_mode = #tpu.pipeline_mode<synchronous>, transform_indices = @transform_4, window_bounds = array<i64: 1, 256>}, {pipeline_mode = #tpu.pipeline_mode<synchronous>, transform_indices = @transform_5, window_bounds = array<i64: 256, 256>}, {pipeline_mode = #tpu.pipeline_mode<synchronous>, transform_indices = @transform_6, window_bounds = array<i64: 1, 256>}, {pipeline_mode = #tpu.pipeline_mode<synchronous>, transform_indices = @transform_7, window_bounds = array<i64: 256, 128>}, {pipeline_mode = #tpu.pipeline_mode<synchronous>, transform_indices = @transform_8, window_bounds = array<i64: 1, 128>}, {transform_indices = @transform_9, window_bounds = array<i64: 8, 1>}, {transform_indices = @transform_10, window_bounds = array<i64: 8, 1>}]} {
    %c0 = arith.constant 0 : index
    %c0_0 = arith.constant 0 : index
    %0 = vector.load %arg1[%c0, %c0_0] : memref<8x128xf32, #tpu.memory_space<vmem>>, vector<8x128xf32>
    %1 = arith.truncf %0 : vector<8x128xf32> to vector<8x128xbf16>
    %c0_1 = arith.constant 0 : index
    %c0_2 = arith.constant 0 : index
    %2 = vector.load %arg2[%c0_1, %c0_2] : memref<128x256xbf16, #tpu.memory_space<vmem>>, vector<128x256xbf16>
    %cst = arith.constant dense<0.000000e+00> : vector<8x256xf32>
    %3 = tpu.matmul %1, %2, %cst {dimension_numbers = #tpu.dot_dimension_numbers<[1], [0], [0], [1], [0, 0, 1, 1], [], []>} : vector<8x128xbf16>, vector<128x256xbf16>, vector<8x256xf32> -> vector<8x256xf32>
    %c0_3 = arith.constant 0 : index
    %c0_4 = arith.constant 0 : index
    %4 = vector.load %arg3[%c0_3, %c0_4] : memref<1x256xf32, #tpu.memory_space<vmem>>, vector<1x256xf32>
    %5 = vector.broadcast %4 : vector<1x256xf32> to vector<8x256xf32>
    %6 = arith.addf %3, %5 : vector<8x256xf32>
    %cst_5 = arith.constant 0.000000e+00 : f32
    %7 = vector.broadcast %cst_5 : f32 to vector<8x256xf32>
    %8 = arith.maximumf %6, %7 : vector<8x256xf32>
    %9 = arith.truncf %8 : vector<8x256xf32> to vector<8x256xbf16>
    %c0_6 = arith.constant 0 : index
    %c0_7 = arith.constant 0 : index
    %10 = vector.load %arg4[%c0_6, %c0_7] : memref<256x256xbf16, #tpu.memory_space<vmem>>, vector<256x256xbf16>
    %cst_8 = arith.constant dense<0.000000e+00> : vector<8x256xf32>
    %11 = tpu.matmul %9, %10, %cst_8 {dimension_numbers = #tpu.dot_dimension_numbers<[1], [0], [0], [1], [0, 0, 1, 1], [], []>} : vector<8x256xbf16>, vector<256x256xbf16>, vector<8x256xf32> -> vector<8x256xf32>
    %c0_9 = arith.constant 0 : index
    %c0_10 = arith.constant 0 : index
    %12 = vector.load %arg5[%c0_9, %c0_10] : memref<1x256xf32, #tpu.memory_space<vmem>>, vector<1x256xf32>
    %13 = vector.broadcast %12 : vector<1x256xf32> to vector<8x256xf32>
    %14 = arith.addf %11, %13 : vector<8x256xf32>
    %cst_11 = arith.constant 0.000000e+00 : f32
    %15 = vector.broadcast %cst_11 : f32 to vector<8x256xf32>
    %16 = arith.maximumf %14, %15 : vector<8x256xf32>
    %17 = arith.truncf %16 : vector<8x256xf32> to vector<8x256xbf16>
    %c0_12 = arith.constant 0 : index
    %c0_13 = arith.constant 0 : index
    %18 = vector.load %arg6[%c0_12, %c0_13] : memref<256x256xbf16, #tpu.memory_space<vmem>>, vector<256x256xbf16>
    %cst_14 = arith.constant dense<0.000000e+00> : vector<8x256xf32>
    %19 = tpu.matmul %17, %18, %cst_14 {dimension_numbers = #tpu.dot_dimension_numbers<[1], [0], [0], [1], [0, 0, 1, 1], [], []>} : vector<8x256xbf16>, vector<256x256xbf16>, vector<8x256xf32> -> vector<8x256xf32>
    %c0_15 = arith.constant 0 : index
    %c0_16 = arith.constant 0 : index
    %20 = vector.load %arg7[%c0_15, %c0_16] : memref<1x256xf32, #tpu.memory_space<vmem>>, vector<1x256xf32>
    %21 = vector.broadcast %20 : vector<1x256xf32> to vector<8x256xf32>
    %22 = arith.addf %19, %21 : vector<8x256xf32>
    %cst_17 = arith.constant 0.000000e+00 : f32
    %23 = vector.broadcast %cst_17 : f32 to vector<8x256xf32>
    %24 = arith.maximumf %22, %23 : vector<8x256xf32>
    %25 = arith.truncf %24 : vector<8x256xf32> to vector<8x256xbf16>
    %c0_18 = arith.constant 0 : index
    %c0_19 = arith.constant 0 : index
    %26 = vector.load %arg8[%c0_18, %c0_19] : memref<256x128xbf16, #tpu.memory_space<vmem>>, vector<256x128xbf16>
    %cst_20 = arith.constant dense<0.000000e+00> : vector<8x128xf32>
    %27 = tpu.matmul %25, %26, %cst_20 {dimension_numbers = #tpu.dot_dimension_numbers<[1], [0], [0], [1], [0, 0, 1, 1], [], []>} : vector<8x256xbf16>, vector<256x128xbf16>, vector<8x128xf32> -> vector<8x128xf32>
    %c0_21 = arith.constant 0 : index
    %c0_22 = arith.constant 0 : index
    %28 = vector.load %arg9[%c0_21, %c0_22] : memref<1x128xf32, #tpu.memory_space<vmem>>, vector<1x128xf32>
    %29 = vector.broadcast %28 : vector<1x128xf32> to vector<8x128xf32>
    %30 = arith.addf %27, %29 : vector<8x128xf32>
    %c0_23 = arith.constant 0 : index
    %c0_24 = arith.constant 0 : index
    %31 = vector.load %arg10[%c0_23, %c0_24] : memref<8x1xi32, #tpu.memory_space<vmem>>, vector<8x1xi32>
    %cst_25 = arith.constant dense<0xFF800000> : vector<8xf32>
    %32 = vector.multi_reduction <maximumf>, %30, %cst_25 [1] : vector<8x128xf32> to vector<8xf32>
    %33 = vector.shape_cast %32 : vector<8xf32> to vector<8x1xf32>
    %34 = vector.broadcast %33 : vector<8x1xf32> to vector<8x128xf32>
    %35 = arith.subf %30, %34 : vector<8x128xf32>
    %36 = math.exp %35 : vector<8x128xf32>
    %cst_26 = arith.constant dense<0.000000e+00> : vector<8xf32>
    %37 = vector.multi_reduction <add>, %36, %cst_26 [1] : vector<8x128xf32> to vector<8xf32>
    %38 = vector.shape_cast %37 : vector<8xf32> to vector<8x1xf32>
    %39 = math.log %38 : vector<8x1xf32>
    %40 = arith.addf %33, %39 : vector<8x1xf32>
    %41 = tpu.iota {dimensions = array<i32: 1>} : vector<8x128xi32>
    %42 = vector.broadcast %31 : vector<8x1xi32> to vector<8x128xi32>
    %43 = arith.cmpi eq, %41, %42 : vector<8x128xi32>
    %cst_27 = arith.constant 0.000000e+00 : f32
    %44 = vector.broadcast %cst_27 : f32 to vector<8x128xf32>
    %45 = arith.select %43, %30, %44 : vector<8x128xi1>, vector<8x128xf32>
    %cst_28 = arith.constant dense<0.000000e+00> : vector<8xf32>
    %46 = vector.multi_reduction <add>, %45, %cst_28 [1] : vector<8x128xf32> to vector<8xf32>
    %47 = vector.shape_cast %46 : vector<8xf32> to vector<8x1xf32>
    %48 = arith.subf %40, %47 : vector<8x1xf32>
    %c0_29 = arith.constant 0 : index
    %c0_30 = arith.constant 0 : index
    %49 = vector.load %arg11[%c0_29, %c0_30] : memref<8x1xf32, #tpu.memory_space<vmem>>, vector<8x1xf32>
    tpu.vector_store %arg11[%c0_29, %c0_30], %48 {strides = array<i32>} : memref<8x1xf32, #tpu.memory_space<vmem>>, vector<8x1xf32>,
    return
  }
  func.func @transform_0(%arg0: i32) -> (i32, i32) {
    %c0_i32 = arith.constant 0 : i32
    %c0_i32_0 = arith.constant 0 : i32
    return %arg0, %c0_i32 : i32, i32
  }
  func.func @transform_1(%arg0: i32) -> (i32, i32) {
    %c0_i32 = arith.constant 0 : i32
    %c0_i32_0 = arith.constant 0 : i32
    %c0_i32_1 = arith.constant 0 : i32
    return %c0_i32, %c0_i32_0 : i32, i32
  }
  func.func @transform_2(%arg0: i32) -> (i32, i32) {
    %c0_i32 = arith.constant 0 : i32
    %c0_i32_0 = arith.constant 0 : i32
    %c0_i32_1 = arith.constant 0 : i32
    return %c0_i32, %c0_i32_0 : i32, i32
  }
  func.func @transform_3(%arg0: i32) -> (i32, i32) {
    %c0_i32 = arith.constant 0 : i32
    %c0_i32_0 = arith.constant 0 : i32
    %c0_i32_1 = arith.constant 0 : i32
    return %c0_i32, %c0_i32_0 : i32, i32
  }
  func.func @transform_4(%arg0: i32) -> (i32, i32) {
    %c0_i32 = arith.constant 0 : i32
    %c0_i32_0 = arith.constant 0 : i32
    %c0_i32_1 = arith.constant 0 : i32
    return %c0_i32, %c0_i32_0 : i32, i32
  }
  func.func @transform_5(%arg0: i32) -> (i32, i32) {
    %c0_i32 = arith.constant 0 : i32
    %c0_i32_0 = arith.constant 0 : i32
    %c0_i32_1 = arith.constant 0 : i32
    return %c0_i32, %c0_i32_0 : i32, i32
  }
  func.func @transform_6(%arg0: i32) -> (i32, i32) {
    %c0_i32 = arith.constant 0 : i32
    %c0_i32_0 = arith.constant 0 : i32
    %c0_i32_1 = arith.constant 0 : i32
    return %c0_i32, %c0_i32_0 : i32, i32
  }
  func.func @transform_7(%arg0: i32) -> (i32, i32) {
    %c0_i32 = arith.constant 0 : i32
    %c0_i32_0 = arith.constant 0 : i32
    %c0_i32_1 = arith.constant 0 : i32
    return %c0_i32, %c0_i32_0 : i32, i32
  }
  func.func @transform_8(%arg0: i32) -> (i32, i32) {
    %c0_i32 = arith.constant 0 : i32
    %c0_i32_0 = arith.constant 0 : i32
    %c0_i32_1 = arith.constant 0 : i32
    return %c0_i32, %c0_i32_0 : i32, i32
  }
  func.func @transform_9(%arg0: i32) -> (i32, i32) {
    %c0_i32 = arith.constant 0 : i32
    %c0_i32_0 = arith.constant 0 : i32
    return %arg0, %c0_i32 : i32, i32
  }
  func.func @transform_10(%arg0: i32) -> (i32, i32) {
    %c0_i32 = arith.constant 0 : i32
    %c0_i32_0 = arith.constant 0 : i32
    return %arg0, %c0_i32 : i32, i32
  }
}

</mosaic_0001>

<bundles_post_ra>
// kernel: tpu_custom_call.1
= control target key start
LH: loop header
LB: loop body
LE: loop exit
PB: predicated region body
PF: predicated region fallthrough
CT: control target
= control target key end

     0   :  { %15 = vsyncpa [#allocation3], 0  ;;  %s2108_s0 = inlined_call_operand.vmem [shape: f32[16,128], index: 0, kind: input, shape index: {}]   ;;  %s2109_s1 = inlined_call_operand.hbm [shape: bf16[128,256], index: 1, kind: input, shape index: {}]   ;;  %s2110_s2 = inlined_call_operand.vmem [shape: f32[1,256], index: 2, kind: input, shape index: {}]   ;;  %s2111_s3 = inlined_call_operand.hbm [shape: bf16[256,256], index: 3, kind: input, shape index: {}]   ;;  %s2112_s4 = inlined_call_operand.vmem [shape: f32[1,256], index: 4, kind: input, shape index: {}]   ;;  %s2113_s5 = inlined_call_operand.hbm [shape: bf16[256,256], index: 5, kind: input, shape index: {}]   ;;  %s2114_s6 = inlined_call_operand.vmem [shape: f32[1,256], index: 6, kind: input, shape index: {}]   ;;  %s2115_s7 = inlined_call_operand.hbm [shape: bf16[256,128], index: 7, kind: input, shape index: {}]   ;;  %s2116_s8 = inlined_call_operand.vmem [shape: f32[1,128], index: 8, kind: input, shape index: {}]   ;;  %s2117_s9 = inlined_call_operand.vmem [shape: s32[16,1], index: 9, kind: input, shape index: {}]   ;;  %s2118_s10 = inlined_call_operand.vmem [shape: f32[16,1], index: 10, kind: output, shape index: {}]  }
   0x1   :  { %16 = vsyncpa [#allocation5], 0 }
   0x2   :  { %17 = vsyncpa [#allocation8], 0  ;;  %s1917_s13 = smov 0  }
   0x3 LB: > { %s1923_s14 = sadd.s32 4294967295, %s1851_s13   ;;  %p1391_p0 = scmp.ge.s32.totalorder %s1851_s13, 1  ;;  %s1851_s13 = sphi %s1917_s13, %s23_s13  }
   0x4   : > { %p274_p1 = scmp.lt.s32.totalorder %s1851_s13, 3  ;;  %p2119_p2 = scmp.eq.s32.totalorder %s1923_s14, 0 }
   0x5   : > { %s1853_s16 = smov [#allocation4]   ;;  %s1854_s18 = smov [#allocation2]  }
   0x6   : > { %p1928_p3 = pnand %p1391_p0, %p274_p1  ;;  %s302_s17 = sshll.u32 %s1853_s16, 4  ;;  %s1932_s17 = int_to_ptr.vmem [resolvable:$true] %s302_s17 }
   0x7   : > { %s286_s19 = sshll.u32 %s1854_s18, 4  ;;  %s1855_s21 = smov [#allocation6]   ;;  %s1936_s19 = int_to_ptr.vmem [resolvable:$true] %s286_s19 }
   0x8   : > { %s2121_s15 = scalar_select %p1928_p3, 1, 0 }
   0x9   : > { %p1542_p4 = pneg %p1928_p3  ;;  %s318_s22 = sshll.u32 %s1855_s21, 4  ;;  %s1944_s22 = int_to_ptr.vmem [resolvable:$true] %s318_s22 }
   0xa   : > { %s1856_s23 = smov [#allocation7]   ;;  %s1721_s27 = scalar_lea.hbm %s2111_s3, 4096 }
   0xb   : > { %p1940_p5 = pnand %p2119_p2, %p1542_p4  ;;  %s1946_s24 = sshll.u32 %s1856_s23, 4  ;;  %s335_s24 = int_to_ptr.vmem [resolvable:$true] %s1946_s24 }
   0xc   : > { %p1722_p6 = scmp.ne.s32.totalorder %s2111_s3, %s1721_s27  ;;  %p1728_p10 = scmp.lt.u32.totalorder %s1721_s27, %s2111_s3 }
   0xd   : > { %p1956_p7 = pneg %p1940_p5 }
   0xf   : > { %p1724_p8 = pnand %p1956_p7, %p1722_p6 }
  0x11   : > { %p1725_p9 = pneg %p1724_p8 }
  0x13   : > { %p1730_p11 = pnand %p1728_p10, %p1725_p9 }
  0x15   : > { %1733 = shalt.err (!%p1730_p11)
}
  0x16   : > { %s1734_s16 = scalar_lea.vmem %s1932_s17, 4096  ;;  %p1742_p1 = scmp.lt.s32.totalorder %s1932_s17, %s1932_s17 }
  0x17   : > { %p1735_p12 = scmp.ne.s32.totalorder %s1932_s17, %s1734_s16  ;;  %p1743_p4 = scmp.lt.s32.totalorder %s1734_s16, %s1734_s16 }
  0x19   : > { %p1737_p13 = pnand %p1735_p12, %p1956_p7  ;;  %p1744_p6 = por %p1743_p4, %p1742_p1 }
  0x1b   : > { %p1738_p0 = pneg %p1737_p13 }
  0x1d   : > { %p1745_p8 = pnand %p1744_p6, %p1738_p0 }
  0x1f   : > { %1748 = shalt.err (!%p1745_p8)
}
  0x20   : > { %s1857_s18 = smov 128   ;;  %s1858_s21 = smov 8  }
  0x21   : > { %1548 = dma.hbm_to_vmem [thread:$0]  (!%p1940_p5), %s2111_s3, 4096, %s1932_s17, [#allocation5], %s1857_s18, %s1857_s18, %s1858_s21  }
  0x22   : > { %s1749_s28 = scalar_lea.hbm %s2109_s1, 2048 }
  0x23   : > { %p1750_p9 = scmp.ne.s32.totalorder %s2109_s1, %s1749_s28  ;;  %p1756_p12 = scmp.lt.u32.totalorder %s1749_s28, %s2109_s1 }
  0x25   : > { %p1752_p10 = pnand %p1750_p9, %p1956_p7 }
  0x27   : > { %p1753_p11 = pneg %p1752_p10 }
  0x29   : > { %p1758_p13 = pnand %p1756_p12, %p1753_p11 }
  0x2b   : > { %1761 = shalt.err (!%p1758_p13)
}
  0x2c   : > { %s1762_s17 = scalar_lea.vmem %s1936_s19, 2048  ;;  %p1770_p6 = scmp.lt.s32.totalorder %s1936_s19, %s1936_s19 }
  0x2d   : > { %p1763_p0 = scmp.ne.s32.totalorder %s1936_s19, %s1762_s17  ;;  %p1771_p8 = scmp.lt.s32.totalorder %s1762_s17, %s1762_s17 }
  0x2f   : > { %p1765_p1 = pnand %p1763_p0, %p1956_p7  ;;  %p1772_p9 = por %p1771_p8, %p1770_p6 }
  0x31   : > { %p1766_p4 = pneg %p1765_p1 }
  0x33   : > { %p1773_p10 = pnand %p1772_p9, %p1766_p4 }
  0x35   : > { %1776 = shalt.err (!%p1773_p10)
}
  0x36   : > { %1545 = dma.hbm_to_vmem [thread:$0]  (!%p1940_p5), %s2109_s1, 2048, %s1936_s19, [#allocation3], %s1857_s18, %s1857_s18, %s1858_s21  }
  0x37   : > { %s1777_s28 = scalar_lea.hbm %s2113_s5, 4096 }
  0x38   : > { %p1778_p11 = scmp.ne.s32.totalorder %s2113_s5, %s1777_s28  ;;  %p1784_p0 = scmp.lt.u32.totalorder %s1777_s28, %s2113_s5 }
  0x3a   : > { %p1780_p12 = pnand %p1778_p11, %p1956_p7 }
  0x3c   : > { %p1781_p13 = pneg %p1780_p12 }
  0x3e   : > { %p1786_p1 = pnand %p1784_p0, %p1781_p13 }
  0x40   : > { %1789 = shalt.err (!%p1786_p1)
}
  0x41   : > { %s1790_s19 = scalar_lea.vmem %s1944_s22, 4096  ;;  %p1798_p9 = scmp.lt.s32.totalorder %s1944_s22, %s1944_s22 }
  0x42   : > { %p1791_p4 = scmp.ne.s32.totalorder %s1944_s22, %s1790_s19  ;;  %p1799_p10 = scmp.lt.s32.totalorder %s1790_s19, %s1790_s19 }
  0x44   : > { %p1793_p6 = pnand %p1791_p4, %p1956_p7  ;;  %p1800_p11 = por %p1799_p10, %p1798_p9 }
  0x46   : > { %p1794_p8 = pneg %p1793_p6 }
  0x48   : > { %p1801_p12 = pnand %p1800_p11, %p1794_p8 }
  0x4a   : > { %1804 = shalt.err (!%p1801_p12)
}
  0x4b   : > { %1551 = dma.hbm_to_vmem [thread:$0]  (!%p1940_p5), %s2113_s5, 4096, %s1944_s22, [#allocation5], %s1857_s18, %s1857_s18, %s1858_s21  }
  0x4c   : > { %s1805_s27 = scalar_lea.hbm %s2115_s7, 2048 }
  0x4d   : > { %p1806_p13 = scmp.ne.s32.totalorder %s2115_s7, %s1805_s27  ;;  %p1812_p4 = scmp.lt.u32.totalorder %s1805_s27, %s2115_s7 }
  0x4f   : > { %p1808_p0 = pnand %p1806_p13, %p1956_p7 }
  0x51   : > { %p1809_p1 = pneg %p1808_p0 }
  0x53   : > { %p1814_p6 = pnand %p1812_p4, %p1809_p1 }
  0x55   : > { %1817 = shalt.err (!%p1814_p6)
}
  0x56   : > { %s1818_s16 = scalar_lea.vmem %s335_s24, 2048  ;;  %p1826_p11 = scmp.lt.s32.totalorder %s335_s24, %s335_s24 }
  0x57   : > { %p1819_p8 = scmp.ne.s32.totalorder %s335_s24, %s1818_s16  ;;  %p1827_p12 = scmp.lt.s32.totalorder %s1818_s16, %s1818_s16 }
  0x59   : > { %p1821_p9 = pnand %p1819_p8, %p1956_p7  ;;  %p1828_p2 = por %p1827_p12, %p1826_p11 }
  0x5b   : > { %p1822_p10 = pneg %p1821_p9 }
  0x5d   : > { %p1829_p3 = pnand %p1828_p2, %p1822_p10 }
  0x5f   : > { %1832 = shalt.err (!%p1829_p3)
}
  0x60   : > { %s1859_s22 = smov 64   ;;  %s1860_s18 = smov 4  }
  0x61   : > { %1554 = dma.hbm_to_vmem [thread:$0]  (!%p1940_p5), %s2115_s7, 2048, %s335_s24, [#allocation8], %s1859_s22, %s1859_s22, %s1860_s18  }
  0x62   : > { %p2124_p13 = scmp.ne.s32.totalorder %s2121_s15, 0 }
  0x63   : > { %p2125_p0 = scmp.eq.s32.totalorder (!%p2124_p13), %s1923_s14, 0 }
  0x64   : > { %367 = sbr.rel (%p2124_p13) target bundleno = 1342 (0x53e), region = 60 }
  0x6b   : > { %1838 = dma.done.wait (%p2125_p0), [#allocation3], 2048   ;;  %p2126_p7 = pmov %p2125_p0 }
  0x6c   : > { %p2127_p2 = pmov %p2125_p0 }
  0x6d   : > { %1840 = vsyncadd (%p2126_p7), [#allocation3], 4294965248 }
  0x6e   : > { %1842 = dma.done.wait (%p2127_p2), [#allocation5], 8192   ;;  %p2128_p3 = pmov %p2125_p0 }
  0x6f   : > { %p2129_p1 = pmov %p2125_p0 }
  0x70   : > { %1844 = vsyncadd (%p2128_p3), [#allocation5], 4294959104 }
  0x71   : > { %1846 = dma.done.wait (%p2129_p1), [#allocation8], 2048   ;;  %p2130_p5 = pmov %p2125_p0 }
  0x72   : > { %v1861_v0 = vmov 0   ;;  %v1581_v1 = vld [vmem:[#allocation2 + $0x4] ss:$8 sps:$4 sm:$0xff]   ;;  %v1583_v2 = vld [vmem:[#allocation2] ss:$8 sps:$4 sm:$0xff]   ;;  %p419_p4 = scmp.lt.s32.totalorder %s1923_s14, 1 }
  0x73   : > { %1848 = vsyncadd (%p2130_p5), [#allocation8], 4294965248  ;;  %574 = vmatprep.mubr.bf16.mxu0 %v1861_v0  ;;  %1580 = vset.pattern.permute.xlu0 %v1861_v0  ;;  %v1584_v3 = vld [vmem:[#allocation2 + $0x14] ss:$8 sps:$4 sm:$0xff]   ;;  %v1586_v4 = vld [vmem:[#allocation2 + $0x10] ss:$8 sps:$4 sm:$0xff]  }
  0x74   : > { %542 = vmatprep.subr.bf16.mxu0 %v1581_v1  ;;  %v1587_v5 = vld [vmem:[#allocation2 + $0x24] ss:$8 sps:$4 sm:$0xff]   ;;  %v1589_v6 = vld [vmem:[#allocation2 + $0x20] ss:$8 sps:$4 sm:$0xff]   ;;  %v1590_v7 = vld [vmem:[#allocation2 + $0x34] ss:$8 sps:$4 sm:$0xff]  }
  0x75   : > { %543 = vmatpush1.bf16.msra.mxu0 %v1583_v2  ;;  %v1592_v8 = vld [vmem:[#allocation2 + $0x30] ss:$8 sps:$4 sm:$0xff]   ;;  %v1593_v9 = vld [vmem:[#allocation2 + $0x44] ss:$8 sps:$4 sm:$0xff]   ;;  %v1607_v11 = vld [vmem:[#allocation4] ss:$8 sps:$4 sm:$0xff]  }
  0x76   : > { %544 = vmatprep.subr.bf16.mxu0 %v1584_v3  ;;  %v1605_v10 = vld [vmem:[#allocation4 + $0x4] ss:$8 sps:$4 sm:$0xff]   ;;  %v1608_v12 = vld [vmem:[#allocation4 + $0x14] ss:$8 sps:$4 sm:$0xff]   ;;  %v1595_v13 = vld [vmem:[#allocation2 + $0x40] ss:$8 sps:$4 sm:$0xff]  }
  0x77   : > { %791 = vmatprep.subr.bf16.mxu1 %v1605_v10  ;;  %v1610_v14 = vld [vmem:[#allocation4 + $0x10] ss:$8 sps:$4 sm:$0xff]   ;;  %v1611_v15 = vld [vmem:[#allocation4 + $0x24] ss:$8 sps:$4 sm:$0xff]   ;;  %v1596_v16 = vld [vmem:[#allocation2 + $0x54] ss:$8 sps:$4 sm:$0xff]  }
  0x78   : > { %792 = vmatpush1.bf16.msra.mxu1 %v1607_v11  ;;  %s2132_s14 = smov (!%p419_p4, %s1923_s14), 1  ;;  %v1598_v17 = vld [vmem:[#allocation2 + $0x50] ss:$8 sps:$4 sm:$0xff]   ;;  %v1613_v18 = vld [vmem:[#allocation4 + $0x20] ss:$8 sps:$4 sm:$0xff]   ;;  %vm1281_vm1 = vcmask 7168  }
  0x79   : > { %545 = vmatpush1.bf16.msra.mxu0 %v1586_v4  ;;  %793 = vmatprep.subr.bf16.mxu1 %v1608_v12  ;;  %v1614_v19 = vld [vmem:[#allocation4 + $0x34] ss:$8 sps:$4 sm:$0xff]   ;;  %v1599_v20 = vld [vmem:[#allocation2 + $0x64] ss:$8 sps:$4 sm:$0xff]   ;;  %s2067_s15 = sshll.u32 %s2132_s14, 3 }
  0x7a   : > { %546 = vmatprep.subr.bf16.mxu0 %v1587_v5  ;;  %v1601_v21 = vld [vmem:[#allocation2 + $0x60] ss:$8 sps:$4 sm:$0xff]   ;;  %v1616_v22 = vld [vmem:[#allocation4 + $0x30] ss:$8 sps:$4 sm:$0xff]   ;;  %s422_s30 = scalar_lea.vmem %s2108_s0, %s2067_s15  ;;  %v1617_v23 = vld [vmem:[#allocation4 + $0x44] ss:$8 sps:$4 sm:$0xff]   ;;  %s426_s16 = scalar_lea.vmem %s2117_s9, %s2067_s15 }
  0x7b   : > { %v1602_v24 = vld [vmem:[#allocation2 + $0x74] ss:$8 sps:$4 sm:$0xff]   ;;  %v1604_v25 = vld [vmem:[#allocation2 + $0x70] ss:$8 sps:$4 sm:$0xff]   ;;  %v432_v26 = vld [vmem:[%s422_s30] sm:$0xff]  ;;  %s430_s21 = scalar_lea.vmem %s2118_s10, %s2067_s15 }
  0x7c   : > { %794 = vmatpush1.bf16.msra.mxu1 %v1610_v14  ;;  %v1619_v27 = vld [vmem:[#allocation4 + $0x40] ss:$8 sps:$4 sm:$0xff]   ;;  %v1620_v28 = vld [vmem:[#allocation4 + $0x54] ss:$8 sps:$4 sm:$0xff]   ;;  %v1622_v29 = vld [vmem:[#allocation4 + $0x50] ss:$8 sps:$4 sm:$0xff]   ;;  %v433_v31 = vpack.c.bf16 %v432_v26, %v432_v26 }
  0x7d   : > { %547 = vmatpush1.bf16.msra.mxu0 %v1589_v6  ;;  %795 = vmatprep.subr.bf16.mxu1 %v1611_v15  ;;  %v1623_v30 = vld [vmem:[#allocation4 + $0x64] ss:$8 sps:$4 sm:$0xff]   ;;  %v1625_v32 = vld [vmem:[#allocation4 + $0x60] ss:$8 sps:$4 sm:$0xff]   ;;  %v1626_v33 = vld [vmem:[#allocation4 + $0x74] ss:$8 sps:$4 sm:$0xff]   ;;  %v452_v15 = vlaneseq }
  0x7e   : > { %548 = vmatprep.subr.bf16.mxu0 %v1590_v7  ;;  %v1628_v34 = vld [vmem:[#allocation4 + $0x70] ss:$8 sps:$4 sm:$0xff]   ;;  %v1629_v35 = vld [vmem:[#allocation4 + $0x84] ss:$8 sps:$4 sm:$0xff]   ;;  %v1631_v36 = vld [vmem:[#allocation4 + $0x80] ss:$8 sps:$4 sm:$0xff]  }
  0x7f   : > { %v1632_v37 = vld [vmem:[#allocation4 + $0x94] ss:$8 sps:$4 sm:$0xff]   ;;  %v1634_v38 = vld [vmem:[#allocation4 + $0x90] ss:$8 sps:$4 sm:$0xff]   ;;  %v1635_v39 = vld [vmem:[#allocation4 + $0xa4] ss:$8 sps:$4 sm:$0xff]  }
  0x80   : > { %796 = vmatpush1.bf16.msra.mxu1 %v1613_v18  ;;  %v1637_v40 = vld [vmem:[#allocation4 + $0xa0] ss:$8 sps:$4 sm:$0xff]   ;;  %v1638_v41 = vld [vmem:[#allocation4 + $0xb4] ss:$8 sps:$4 sm:$0xff]   ;;  %v1640_v42 = vld [vmem:[#allocation4 + $0xb0] ss:$8 sps:$4 sm:$0xff]  }
  0x81   : > { %549 = vmatpush1.bf16.msra.mxu0 %v1592_v8  ;;  %797 = vmatprep.subr.bf16.mxu1 %v1614_v19  ;;  %v1641_v43 = vld [vmem:[#allocation4 + $0xc4] ss:$8 sps:$4 sm:$0xff]   ;;  %v1643_v44 = vld [vmem:[#allocation4 + $0xc0] ss:$8 sps:$4 sm:$0xff]   ;;  %v1644_v45 = vld [vmem:[#allocation4 + $0xd4] ss:$8 sps:$4 sm:$0xff]  }
  0x82   : > { %550 = vmatprep.subr.bf16.mxu0 %v1593_v9  ;;  %v1646_v46 = vld [vmem:[#allocation4 + $0xd0] ss:$8 sps:$4 sm:$0xff]   ;;  %v1647_v47 = vld [vmem:[#allocation4 + $0xe4] ss:$8 sps:$4 sm:$0xff]   ;;  %v1649_v48 = vld [vmem:[#allocation4 + $0xe0] ss:$8 sps:$4 sm:$0xff]  }
  0x83   : > { %v1650_v49 = vld [vmem:[#allocation4 + $0xf4] ss:$8 sps:$4 sm:$0xff]   ;;  %v1652_v50 = vld [vmem:[#allocation4 + $0xf0] ss:$8 sps:$4 sm:$0xff]   ;;  %v1653_v51 = vld [vmem:[#allocation6] ss:$8 sps:$4 sm:$0xff]  }
  0x84   : > { %798 = vmatpush1.bf16.msra.mxu1 %v1616_v22  ;;  %v1655_v52 = vld [vmem:[#allocation6 + $0x4] ss:$8 sps:$4 sm:$0xff]   ;;  %v1658_v53 = vld [vmem:[#allocation6 + $0x14] ss:$8 sps:$4 sm:$0xff]   ;;  %v1656_v54 = vld [vmem:[#allocation6 + $0x10] ss:$8 sps:$4 sm:$0xff]  }
  0x85   : > { %551 = vmatpush1.bf16.msra.mxu0 %v1595_v13  ;;  %799 = vmatprep.subr.bf16.mxu1 %v1617_v23  ;;  %v1661_v55 = vld [vmem:[#allocation6 + $0x24] ss:$8 sps:$4 sm:$0xff]   ;;  %v1659_v56 = vld [vmem:[#allocation6 + $0x20] ss:$8 sps:$4 sm:$0xff]   ;;  %v1664_v57 = vld [vmem:[#allocation6 + $0x34] ss:$8 sps:$4 sm:$0xff]  }
  0x86   : > { %552 = vmatprep.subr.bf16.mxu0 %v1596_v16  ;;  %v1662_v58 = vld [vmem:[#allocation6 + $0x30] ss:$8 sps:$4 sm:$0xff]   ;;  %v1667_v59 = vld [vmem:[#allocation6 + $0x44] ss:$8 sps:$4 sm:$0xff]   ;;  %v1665_v60 = vld [vmem:[#allocation6 + $0x40] ss:$8 sps:$4 sm:$0xff]  }
  0x87   : > { %v1670_v61 = vld [vmem:[#allocation6 + $0x54] ss:$8 sps:$4 sm:$0xff]   ;;  %v1668_v62 = vld [vmem:[#allocation6 + $0x50] ss:$8 sps:$4 sm:$0xff]   ;;  %v1673_v63 = vld [vmem:[#allocation6 + $0x64] ss:$8 sps:$4 sm:$0xff]  }
  0x88   : > { %800 = vmatpush1.bf16.msra.mxu1 %v1619_v27  ;;  %v1671_v0 = vld [vmem:[#allocation6 + $0x60] ss:$8 sps:$4 sm:$0xff]   ;;  %v1676_v1 = vld [vmem:[#allocation6 + $0x74] ss:$8 sps:$4 sm:$0xff]   ;;  %v1674_v2 = vld [vmem:[#allocation6 + $0x70] ss:$8 sps:$4 sm:$0xff]  }
  0x89   : > { %553 = vmatpush1.bf16.msra.mxu0 %v1598_v17  ;;  %801 = vmatprep.subr.bf16.mxu1 %v1620_v28  ;;  %v1679_v3 = vld [vmem:[#allocation6 + $0x84] ss:$8 sps:$4 sm:$0xff]   ;;  %v1677_v4 = vld [vmem:[#allocation6 + $0x80] ss:$8 sps:$4 sm:$0xff]   ;;  %v1682_v5 = vld [vmem:[#allocation6 + $0x94] ss:$8 sps:$4 sm:$0xff]  }
  0x8a   : > { %554 = vmatprep.subr.bf16.mxu0 %v1599_v20  ;;  %v1680_v6 = vld [vmem:[#allocation6 + $0x90] ss:$8 sps:$4 sm:$0xff]   ;;  %v1685_v7 = vld [vmem:[#allocation6 + $0xa4] ss:$8 sps:$4 sm:$0xff]   ;;  %v1683_v8 = vld [vmem:[#allocation6 + $0xa0] ss:$8 sps:$4 sm:$0xff]  }
  0x8b   : > { %v1688_v9 = vld [vmem:[#allocation6 + $0xb4] ss:$8 sps:$4 sm:$0xff]   ;;  %v1686_v10 = vld [vmem:[#allocation6 + $0xb0] ss:$8 sps:$4 sm:$0xff]   ;;  %v1691_v11 = vld [vmem:[#allocation6 + $0xc4] ss:$8 sps:$4 sm:$0xff]  }
  0x8c   : > { %802 = vmatpush1.bf16.msra.mxu1 %v1622_v29  ;;  %v1689_v12 = vld [vmem:[#allocation6 + $0xc0] ss:$8 sps:$4 sm:$0xff]   ;;  %v1694_v13 = vld [vmem:[#allocation6 + $0xd4] ss:$8 sps:$4 sm:$0xff]   ;;  %v1692_v14 = vld [vmem:[#allocation6 + $0xd0] ss:$8 sps:$4 sm:$0xff]  }
  0x8d   : > { %555 = vmatpush1.bf16.msra.mxu0 %v1601_v21  ;;  %803 = vmatprep.subr.bf16.mxu1 %v1623_v30  ;;  %v453_v16 = vshrl.u32 %v452_v15, 7  ;;  %v450_v18 = vld [vmem:[%s2110_s2] sm:$0x3] }
  0x8e   : > { %556 = vmatprep.subr.bf16.mxu0 %v1602_v24 }
  0x8f   : > { %v2074_v17 = vsub.s32 0, %v453_v16  ;;  %v2079_v19 = vsub.s32 1, %v453_v16  ;;  %v1485_v16 = vld [vmem:[%s2116_s8] ss:$0 sm:$0xff] }
  0x90   : > { %804 = vmatpush1.bf16.msra.mxu1 %v1625_v32  ;;  %v1697_v32 = vld [vmem:[#allocation6 + $0xe4] ss:$8 sps:$4 sm:$0xff]  }
  0x91   : > { %557 = vmatpush1.bf16.msra.mxu0 %v1604_v25  ;;  %805 = vmatprep.subr.bf16.mxu1 %v1626_v33  ;;  %v455_v20 = vrot.slane %v450_v18, %v2074_v17  ;;  %v459_v21 = vrot.slane %v450_v18, %v2079_v19  ;;  %v1695_v33 = vld [vmem:[#allocation6 + $0xe0] ss:$8 sps:$4 sm:$0xff]  }
  0x92   : > { %1040 = vmatprep.subr.bf16.mxu0 %v1655_v52 }
  0x94   : > { %575 = vmatmul.mubr.bf16.vlgmr.msra.gmra.mrb[0].mxu0 %v433_v31  ;;  %806 = vmatpush1.bf16.msra.mxu1 %v1628_v34  ;;  %v1700_v34 = vld [vmem:[#allocation6 + $0xf4] ss:$8 sps:$4 sm:$0xff]  }
  0x95   : > { %807 = vmatprep.subr.bf16.mxu1 %v1629_v35  ;;  %1041 = vmatpush1.bf16.msra.mxu0 %v1653_v51  ;;  %v1698_v35 = vld [vmem:[#allocation6 + $0xf0] ss:$8 sps:$4 sm:$0xff]  }
  0x96   : > { %1042 = vmatprep.subr.bf16.mxu0 %v1658_v53 }
  0x98   : > { %808 = vmatpush1.bf16.msra.mxu1 %v1631_v36  ;;  %v1701_v36 = vld [vmem:[#allocation7 + $0x40] sm:$0xff]  }
  0x99   : > { %809 = vmatprep.subr.bf16.mxu1 %v1632_v37  ;;  %1043 = vmatpush1.bf16.msra.mxu0 %v1656_v54  ;;  %v1702_v37 = vld [vmem:[#allocation7] sm:$0xff]  }
  0x9a   : > { %1044 = vmatprep.subr.bf16.mxu0 %v1661_v55 }
  0x9c   : > { %810 = vmatpush1.bf16.msra.mxu1 %v1634_v38  ;;  %v1703_v38 = vld [vmem:[#allocation7 + $0x48] sm:$0xff]  }
  0x9d   : > { %811 = vmatprep.subr.bf16.mxu1 %v1635_v39  ;;  %1045 = vmatpush1.bf16.msra.mxu0 %v1659_v56  ;;  %v1704_v39 = vld [vmem:[#allocation7 + $0x8] sm:$0xff]  }
  0x9e   : > { %1046 = vmatprep.subr.bf16.mxu0 %v1664_v57 }
  0xa0   : > { %812 = vmatpush1.bf16.msra.mxu1 %v1637_v40  ;;  %v1705_v40 = vld [vmem:[#allocation7 + $0x50] sm:$0xff]  }
  0xa1   : > { %813 = vmatprep.subr.bf16.mxu1 %v1638_v41  ;;  %1047 = vmatpush1.bf16.msra.mxu0 %v1662_v58  ;;  %v1706_v41 = vld [vmem:[#allocation7 + $0x10] sm:$0xff]  }
  0xa2   : > { %1048 = vmatprep.subr.bf16.mxu0 %v1667_v59 }
  0xa4   : > { %814 = vmatpush1.bf16.msra.mxu1 %v1640_v42  ;;  %v1707_v42 = vld [vmem:[#allocation7 + $0x58] sm:$0xff]  }
  0xa5   : > { %815 = vmatprep.subr.bf16.mxu1 %v1641_v43  ;;  %1049 = vmatpush1.bf16.msra.mxu0 %v1665_v60  ;;  %v1708_v43 = vld [vmem:[#allocation7 + $0x18] sm:$0xff]  }
  0xa6   : > { %1050 = vmatprep.subr.bf16.mxu0 %v1670_v61  ;;  %v1713_v61 = vld [vmem:[#allocation7 + $0x70] sm:$0xff]  }
  0xa8   : > { %816 = vmatpush1.bf16.msra.mxu1 %v1643_v44  ;;  %v1709_v44 = vld [vmem:[#allocation7 + $0x60] sm:$0xff]  }
  0xa9   : > { %817 = vmatprep.subr.bf16.mxu1 %v1644_v45  ;;  %1051 = vmatpush1.bf16.msra.mxu0 %v1668_v62  ;;  %v1710_v45 = vld [vmem:[#allocation7 + $0x20] sm:$0xff]   ;;  %v1714_v62 = vld [vmem:[#allocation7 + $0x30] sm:$0xff]  }
  0xaa   : > { %1052 = vmatprep.subr.bf16.mxu0 %v1673_v63  ;;  %v1715_v63 = vld [vmem:[#allocation7 + $0x78] sm:$0xff]  }
  0xac   : > { %818 = vmatpush1.bf16.msra.mxu1 %v1646_v46  ;;  %v1711_v46 = vld [vmem:[#allocation7 + $0x68] sm:$0xff]  }
  0xad   : > { %819 = vmatprep.subr.bf16.mxu1 %v1647_v47  ;;  %1053 = vmatpush1.bf16.msra.mxu0 %v1671_v0  ;;  %v1712_v47 = vld [vmem:[#allocation7 + $0x28] sm:$0xff]   ;;  %v1716_v0 = vld [vmem:[#allocation7 + $0x38] sm:$0xff]  }
  0xae   : > { %1054 = vmatprep.subr.bf16.mxu0 %v1676_v1  ;;  %v868_v1 = vld [vmem:[%s2114_s6] sm:$0x3] }
  0xb0   : > { %820 = vmatpush1.bf16.msra.mxu1 %v1649_v48  ;;  %v619_v48 = vld [vmem:[%s2112_s4] sm:$0x3] }
  0xb1   : > { %821 = vmatprep.subr.bf16.mxu1 %v1650_v49  ;;  %1055 = vmatpush1.bf16.msra.mxu0 %v1674_v2  ;;  %v624_v49 = vrot.slane %v619_v48, %v2074_v17  ;;  %v873_v2 = vrot.slane %v868_v1, %v2074_v17 }
  0xb2   : > { %1056 = vmatprep.subr.bf16.mxu0 %v1679_v3  ;;  %v877_v3 = vrot.slane %v868_v1, %v2079_v19 }
  0xb4   : > { %822 = vmatpush1.bf16.msra.mxu1 %v1652_v50  ;;  %v628_v50 = vrot.slane %v619_v48, %v2079_v19 }
  0xb5   : > { %1057 = vmatpush1.bf16.msra.mxu0 %v1677_v4  ;;  %1504 = vmatprep.subr.bf16.mxu1 %v1701_v36 }
  0xb6   : > { %1058 = vmatprep.subr.bf16.mxu0 %v1682_v5 }
  0xb9   : > { %1059 = vmatpush1.bf16.msra.mxu0 %v1680_v6 }
  0xba   : > { %1060 = vmatprep.subr.bf16.mxu0 %v1685_v7 }
  0xbd   : > { %1061 = vmatpush1.bf16.msra.mxu0 %v1683_v8 }
  0xbe   : > { %1062 = vmatprep.subr.bf16.mxu0 %v1688_v9 }
  0xc1   : > { %1063 = vmatpush1.bf16.msra.mxu0 %v1686_v10 }
  0xc2   : > { %1064 = vmatprep.subr.bf16.mxu0 %v1691_v11 }
  0xc5   : > { %1065 = vmatpush1.bf16.msra.mxu0 %v1689_v12 }
  0xc6   : > { %1066 = vmatprep.subr.bf16.mxu0 %v1694_v13 }
  0xc9   : > { %1067 = vmatpush1.bf16.msra.mxu0 %v1692_v14 }
  0xca   : > { %1068 = vmatprep.subr.bf16.mxu0 %v1697_v32 }
  0xcd   : > { %1069 = vmatpush1.bf16.msra.mxu0 %v1695_v33 }
  0xce   : > { %1070 = vmatprep.subr.bf16.mxu0 %v1700_v34 }
  0xd1   : > { %1071 = vmatpush1.bf16.msra.mxu0 %v1698_v35 }
 0x167   : > { %v576_v22 = vpop.f32.mrb[0].mxu0 }
 0x168   : > { %v577_v23 = vadd.f32 %v576_v22, %v455_v20  ;;  %v578_v24 = vpop.f32.mrb[1].mxu0  ;;  %v1260_v22 = vld [vmem:[%s426_s16] sm:$0xff] }
 0x169   : > { %v579_v25 = vadd.f32 %v578_v24, %v459_v21  ;;  %v580_v26 = vpop.f32.mrb[2].mxu0 }
 0x16a   : > { %v583_v27 = vmax.f32 %v577_v23, 0.0  ;;  %v581_v28 = vpop.f32.mrb[3].mxu0  ;;  %v1272_v26 = vand.u32 127, %v452_v15 }
 0x16b   : > { %v584_v29 = vmax.f32 %v579_v25, 0.0 }
 0x16c   : > { %v585_v31 = vpack.c.bf16 %v583_v27, %v583_v27 }
 0x16d   : > { %v586_v30 = vpack.c.bf16 %v584_v29, %v584_v29 }
 0x16f   : > { %823 = vmatprep.mubr.bf16.mxu1 %v586_v30 }
 0x170   : > { %824 = vmatmul.mubr.bf16.vlgmr.msra.gmra.mrb[0].mxu1 %v585_v31 }
 0x171   : > { %1505 = vmatpush3.bf16.msra.mxu1 %v1702_v37 }
 0x172   : > { %1506 = vmatprep.subr.bf16.mxu1 %v1703_v38 }
 0x175   : > { %1507 = vmatpush3.bf16.msra.mxu1 %v1704_v39 }
 0x176   : > { %1508 = vmatprep.subr.bf16.mxu1 %v1705_v40 }
 0x179   : > { %1509 = vmatpush3.bf16.msra.mxu1 %v1706_v41 }
 0x17a   : > { %1510 = vmatprep.subr.bf16.mxu1 %v1707_v42 }
 0x17d   : > { %1511 = vmatpush3.bf16.msra.mxu1 %v1708_v43 }
 0x17e   : > { %1512 = vmatprep.subr.bf16.mxu1 %v1709_v44 }
 0x181   : > { %1513 = vmatpush3.bf16.msra.mxu1 %v1710_v45 }
 0x182   : > { %1514 = vmatprep.subr.bf16.mxu1 %v1711_v46 }
 0x185   : > { %1515 = vmatpush3.bf16.msra.mxu1 %v1712_v47 }
 0x186   : > { %1516 = vmatprep.subr.bf16.mxu1 %v1713_v61 }
 0x189   : > { %1517 = vmatpush3.bf16.msra.mxu1 %v1714_v62 }
 0x18a   : > { %1518 = vmatprep.subr.bf16.mxu1 %v1715_v63 }
 0x18d   : > { %1519 = vmatpush3.bf16.msra.mxu1 %v1716_v0 }
 0x243   : > { %v825_v51 = vpop.f32.mrb[0].mxu1 }
 0x244   : > { %v826_v52 = vadd.f32 %v825_v51, %v624_v49  ;;  %v827_v53 = vpop.f32.mrb[1].mxu1 }
 0x245   : > { %v828_v54 = vadd.f32 %v827_v53, %v628_v50  ;;  %v829_v55 = vpop.f32.mrb[2].mxu1 }
 0x246   : > { %v832_v56 = vmax.f32 %v826_v52, 0.0  ;;  %v830_v57 = vpop.f32.mrb[3].mxu1 }
 0x247   : > { %v833_v58 = vmax.f32 %v828_v54, 0.0 }
 0x248   : > { %v834_v60 = vpack.c.bf16 %v832_v56, %v832_v56 }
 0x249   : > { %v835_v59 = vpack.c.bf16 %v833_v58, %v833_v58 }
 0x24b   : > { %1072 = vmatprep.mubr.bf16.mxu0 %v835_v59 }
 0x24c   : > { %1073 = vmatmul.mubr.bf16.vlgmr.msra.gmra.mrb[4].mxu0 %v834_v60 }
 0x31f   : > { %v1074_v4 = vpop.f32.mrb[4].mxu0 }
 0x320   : > { %v1075_v5 = vadd.f32 %v1074_v4, %v873_v2  ;;  %v1076_v6 = vpop.f32.mrb[5].mxu0 }
 0x321   : > { %v1077_v7 = vadd.f32 %v1076_v6, %v877_v3  ;;  %v1078_v8 = vpop.f32.mrb[6].mxu0 }
 0x322   : > { %v1081_v9 = vmax.f32 %v1075_v5, 0.0  ;;  %v1079_v10 = vpop.f32.mrb[7].mxu0 }
 0x323   : > { %v1082_v11 = vmax.f32 %v1077_v7, 0.0 }
 0x324   : > { %v1083_v13 = vpack.c.bf16 %v1081_v9, %v1081_v9 }
 0x325   : > { %v1084_v12 = vpack.c.bf16 %v1082_v11, %v1082_v11 }
 0x327   : > { %1252 = vmatprep.mubr.bf16.mxu1 %v1084_v12 }
 0x328   : > { %1253 = vmatmul.mubr.bf16.vlgmr.msra.gmra.mrb[4].mxu1 %v1083_v13 }
 0x3fb   : > { %v1520_v14 = vpop.f32.mrb[4].mxu1 }
 0x3fc   : > { %v1521_v17 = vpop.f32.mrb[5].mxu1 }
 0x3fd   : > { %v1522_v18 = vadd.f32 %v1521_v17, %v1520_v14  ;;  %v1523_v19 = vpop.f32.mrb[6].mxu1 }
 0x3fe   : > { %v1524_v20 = vpop.f32.mrb[7].mxu1 }
 0x3ff   : > { %v1255_v21 = vadd.f32 %v1522_v18, %v1485_v16 }
 0x401   : > { %1261 = vmax.xlane.f32.xlu0 %v1255_v21 }
 0x417   : > { %1274 = vperm.xlu0 %1580, %v1260_v22  }
 0x48e   : > { %v1262_v23 = vpop.xlane.xlu0 %1261 }
 0x48f   : > { %v1263_v24 = vsub.f32 %v1255_v21, %v1262_v23 }
 0x491   : > { %v1264_v25 = vmul.f32 1.442695, %v1263_v24 }
 0x493   : > { %1717 = vpow2.f32 %v1264_v25 }
 0x496   : > { %v1275_v27 = vpop.permute.xlu0 %1274 }
 0x497   : > { %vm1276_vm0 = vcmp.eq.s32.totalorder %v1272_v26, %v1275_v27 }
 0x498   : > { %v1277_v29 = vsel %vm1276_vm0, %v1255_v21, 0.0 }
 0x49d   : > { %v1718_v28 = vpop.eup %1717 }
 0x49e   : > { %1266 = vadd.xlane.f32.xlu1 %v1718_v28 }
 0x4a2   : > { %1278 = vadd.xlane.f32.xlu1 %v1277_v29 }
 0x52b   : > { %v1267_v30 = vpop.xlane.xlu1 %1266 }
 0x52c   : > { %1719 = vlog2.f32 %v1267_v30 }
 0x52f   : > { %v1279_v34 = vpop.xlane.xlu1 %1278 }
 0x536   : > { %v1720_v31 = vpop.eup %1719 }
 0x537   : > { %v1269_v32 = vmul.f32 0.6931472, %v1720_v31 }
 0x539   : > { %v1270_v33 = vadd.f32 %v1269_v32, %v1262_v23 }
 0x53b   : > { %v1280_v35 = vsub.f32 %v1270_v33, %v1279_v34 }
 0x53d   : > { %1282 = vst.msk [vmem:[%s430_s21] sm:$0xff] %vm1281_vm1, %v1280_v35 }
 0x53e PF: > { %s23_s13 = sadd.s32 1, %s1851_s13  }
 0x53f   : > { %p20_p6 = scmp.ge.s32.totalorder %s23_s13, 4  }
 0x541   :  { %22 = sbr.rel (!%p20_p6) target bundleno = 3 (0x3), region = 110 }
 0x548   :  { %1302 = vsyncpa [#allocation3], 1 }
 0x549   :  { %1304 = vsyncpa [#allocation3 + $0x1], 1 }
 0x54a   :  { %1305 = vsyncpa [#allocation5], 1 }
 0x54b   :  { %1306 = vsyncpa [#allocation8], 1 }

</bundles_post_ra>
